<compile_context>
chip_gen: v7x
topology: tpu7x:2x2x1
jax: 0.10.0
libtpu: 0.0.40
codegen_flags: <defaults>
</compile_context>

<pallas_src>
import functools

import jax
import jax.numpy as jnp
from jax.experimental import pallas as pl
from jax.experimental.pallas import tpu as pltpu


LANE = 128          # lane width (last dim multiple)
EDGE_PACK = 16      # bf16 sublane pack: 16 rows per packed vreg


def _round_up(x, m):
    return (x + m - 1) // m * m


def _pad2d(x, rows, cols):
    r, c = x.shape
    return jnp.pad(x, ((0, rows - r), (0, cols - c)))


# ----------------------------------------------------------------------------
# Fused Pallas kernel: conv1 -> ReLU -> conv2 -> stacked gather -> fused Linear
# ----------------------------------------------------------------------------
def netgcn_fused_kernel(a_ref, x_ref, w1_ref, b1_ref, w2_ref, b2_ref,
                        wl_ref, bl_ref, idx_ref, o_ref,
                        *, conv1_aggregate_first, e_pad):
    f32 = jnp.float32
    a = a_ref[...]                     # [Np, Np] bf16  normalized adjacency
    x = x_ref[...]                     # [Np, Fp] bf16  node features
    mxu_dt = a.dtype

    # ---- conv1: H1 = relu(A_hat @ X @ W1 + b1) ------------------------------
    if conv1_aggregate_first:          # F <= H: aggregate, then transform
        ax = jnp.dot(a, x, preferred_element_type=f32).astype(mxu_dt)
        h1 = jnp.dot(ax, w1_ref[...], preferred_element_type=f32)
    else:                              # F > H: transform, then aggregate
        xw = jnp.dot(x, w1_ref[...], preferred_element_type=f32).astype(mxu_dt)
        h1 = jnp.dot(a, xw, preferred_element_type=f32)
    h1 = jnp.maximum(h1 + b1_ref[...], 0.0)            # bias + ReLU in f32

    # ---- conv2: node_feats = A_hat @ H1 @ W2 + b2 ---------------------------
    ah1 = jnp.dot(a, h1.astype(mxu_dt), preferred_element_type=f32).astype(mxu_dt)
    node = jnp.dot(ah1, w2_ref[...], preferred_element_type=f32) + b2_ref[...]
    node_bf = node.astype(mxu_dt)                      # stays in VMEM / vregs

    # ---- edge head ----------------------------------------------------------
    # Stacked one-hot gather: rows [0, e_pad) select src nodes, rows
    # [e_pad, 2*e_pad) select dst nodes.  ONE MXU matmul instead of two.
    # TODO(synk): for non-toy E, replace with jnp.take / DMA row gather.
    n_pad = a_ref.shape[0]
    col = jax.lax.broadcasted_iota(jnp.int32, (2 * e_pad, n_pad), 1)
    g = jnp.where(col == idx_ref[...], 1.0, 0.0).astype(mxu_dt)
    sd = jnp.dot(g, node_bf, preferred_element_type=f32).astype(mxu_dt)  # [2E, H]

    # Fused edge Linear: [E, 2H] @ [2H, H]  (2H = 256 -> one full MXU pass
    # on v6e/v7x; same FLOPs, one fewer matmul + no epilogue add on v5e).
    feats = jnp.concatenate([sd[:e_pad], sd[e_pad:]], axis=1)            # [E, 2H]
    out = jnp.dot(feats, wl_ref[...], preferred_element_type=f32) + bl_ref[...]
    o_ref[...] = out.astype(o_ref.dtype)


# ----------------------------------------------------------------------------
# Graph preprocessing (plain JAX, matches DGL GraphConv norm='both')
# ----------------------------------------------------------------------------
def build_normalized_adjacency(edges_src, edges_dst, num_nodes):
    """Dense A_hat = D_in^{-1/2} A D_out^{-1/2}; degrees clamped to >= 1.

    Duplicate edges accumulate (.add) so multigraph multiplicity is preserved
    in both the message sum and the degrees, as in DGL.
    """
    a = jnp.zeros((num_nodes, num_nodes), jnp.float32)
    # message flows src -> dst: out[v] = sum_u A[v, u] * feat[u]  =>  A[dst, src] += 1
    a = a.at[edges_dst, edges_src].add(1.0)
    out_deg = jnp.clip(a.sum(axis=0), 1.0, None)   # out-degree of each source node
    in_deg = jnp.clip(a.sum(axis=1), 1.0, None)    # in-degree of each destination
    return (in_deg ** -0.5)[:, None] * a * (out_deg ** -0.5)[None, :]


def _vmem_cap_bytes():
    """80% of physical VMEM of the local TPU generation (fallback 64 MiB)."""
    try:
        cap = int(pltpu.get_tpu_info().vmem_capacity_bytes)
    except Exception:
        cap = 64 << 20
    return int(0.8 * cap)


# ----------------------------------------------------------------------------
# NetGCN forward wrapper (padding + single fused pallas_call)
# ----------------------------------------------------------------------------
def netgcn_forward(a_hat, features, src, dst, node_name_to_index, params):
    n, f = features.shape
    h = int(params["b1"].shape[0])
    assert n >= 1

    # Host-side dict lookup, mirroring the PyTorch module.  Pairs are filtered
    # JOINTLY so src/dst indices stay aligned if a name is missing.
    # TODO(synk): this is host logic (static at trace time), same limitation as
    # the original module; a jit-traced variant would need a device lookup table.
    pairs = [
        (node_name_to_index[int(s)], node_name_to_index[int(d)])
        for s, d in zip(src.tolist(), dst.tolist())
        if int(s) in node_name_to_index and int(d) in node_name_to_index
    ]
    e = len(pairs)
    src_idx = [p[0] for p in pairs]
    dst_idx = [p[1] for p in pairs]
    assert all(0 <= i < n for i in src_idx + dst_idx)

    # ---- pad to lane-dense / MXU-friendly shapes ----------------------------
    n_pad = _round_up(n, LANE)
    f_pad = _round_up(f, LANE)
    h_pad = _round_up(h, LANE)
    e_pad = _round_up(max(e, 1), EDGE_PACK)      # bf16: 16 sublanes / packed vreg

    bf16 = jnp.bfloat16
    # NOTE: A_hat normalization coefficients are cast to bf16 (~0.4% rel err);
    # fine for the 3e-2 tolerance here — keep f32 if accuracy must tighten.
    a_p = _pad2d(a_hat, n_pad, n_pad).astype(bf16)
    x_p = _pad2d(features, n_pad, f_pad).astype(bf16)
    w1_p = _pad2d(params["w1"], f_pad, h_pad).astype(bf16)
    w2_p = _pad2d(params["w2"], h_pad, h_pad).astype(bf16)
    # Stacked edge-Linear weight: rows [0, h_pad) act on src feats, rows
    # [h_pad, 2*h_pad) on dst feats  ->  single [E, 2H] @ [2H, H] contraction.
    ws_p = _pad2d(params["w_lin_t"][:h, :], h_pad, h_pad)
    wd_p = _pad2d(params["w_lin_t"][h:, :], h_pad, h_pad)
    wl_p = jnp.concatenate([ws_p, wd_p], axis=0).astype(bf16)     # [2*h_pad, h_pad]
    b1_p = jnp.pad(params["b1"], (0, h_pad - h)).reshape(1, h_pad).astype(jnp.float32)
    b2_p = jnp.pad(params["b2"], (0, h_pad - h)).reshape(1, h_pad).astype(jnp.float32)
    bl_p = jnp.pad(params["b_lin"], (0, h_pad - h)).reshape(1, h_pad).astype(jnp.float32)

    # Stacked src/dst indices; padded slots stay 0 (a real node — padded
    # output rows are sliced off below so this is never observed).
    idx = jnp.zeros((2 * e_pad, 1), jnp.int32)
    if e > 0:
        idx = idx.at[:e, 0].set(jnp.asarray(src_idx, jnp.int32))
        idx = idx.at[e_pad:e_pad + e, 0].set(jnp.asarray(dst_idx, jnp.int32))

    operands = (a_p, x_p, w1_p, b1_p, w2_p, b2_p, wl_p, bl_p, idx)

    # ---- compiler hints: generation-aware VMEM budget + cost estimate -------
    out_bytes = e_pad * h_pad * 4
    operand_bytes = sum(int(op.size) * op.dtype.itemsize for op in operands)
    vmem_limit = int(min(max(2 * (operand_bytes + out_bytes) + (4 << 20), 16 << 20),
                         _vmem_cap_bytes()))

    flops = 2 * (
        n_pad * n_pad * f_pad + n_pad * f_pad * h_pad        # conv1
        + n_pad * n_pad * h_pad + n_pad * h_pad * h_pad      # conv2
        + (2 * e_pad) * n_pad * h_pad                        # stacked one-hot gather
        + e_pad * (2 * h_pad) * h_pad                        # fused edge Linear
    )
    cost = pl.CostEstimate(flops=int(flops), transcendentals=0,
                           bytes_accessed=int(operand_bytes + out_bytes))

    kernel = functools.partial(
        netgcn_fused_kernel,
        conv1_aggregate_first=(f <= h),    # DGL GraphConv's FLOP-ordering rule
        e_pad=e_pad,
    )

    vmem = pl.BlockSpec(memory_space=pltpu.MemorySpace.VMEM)
    out_pad = pl.pallas_call(
        kernel,
        out_shape=jax.ShapeDtypeStruct((e_pad, h_pad), jnp.float32),
        in_specs=[vmem] * len(operands),
        out_specs=vmem,
        compiler_params=pltpu.CompilerParams(vmem_limit_bytes=vmem_limit),
        cost_estimate=cost,
    )(*operands)

    return out_pad[:e, :h]


# ----------------------------------------------------------------------------
# Pure-JAX f32 reference (for numerical sanity check of the bf16 kernel)
# ----------------------------------------------------------------------------
def netgcn_reference(a_hat, features, src_idx, dst_idx, params):
    h1 = jnp.maximum(a_hat @ features @ params["w1"] + params["b1"], 0.0)
    node = a_hat @ h1 @ params["w2"] + params["b2"]
    edge = jnp.concatenate([node[src_idx], node[dst_idx]], axis=1)
    return edge @ params["w_lin_t"] + params["b_lin"]


# ----------------------------------------------------------------------------
# Main
# ----------------------------------------------------------------------------
if __name__ == "__main__":
    key = jax.random.PRNGKey(0)

    num_nodes = 16
    in_feats = 8
    hidden_feats = 32
    num_edges = 24          # graph edges
    num_query_edges = 8     # src/dst pairs fed to the edge predictor

    keys = jax.random.split(key, 10)

    # Shapes from NetGCN.__init__ (Linear weight stored transposed: [2H, H]).
    params = {
        "w1": jax.random.normal(keys[0], (in_feats, hidden_feats), jnp.float32) * 0.1,
        "b1": jax.random.normal(keys[1], (hidden_feats,), jnp.float32) * 0.1,
        "w2": jax.random.normal(keys[2], (hidden_feats, hidden_feats), jnp.float32) * 0.1,
        "b2": jax.random.normal(keys[3], (hidden_feats,), jnp.float32) * 0.1,
        "w_lin_t": jax.random.normal(keys[4], (2 * hidden_feats, hidden_feats), jnp.float32) * 0.1,
        "b_lin": jax.random.normal(keys[5], (hidden_feats,), jnp.float32) * 0.1,
    }

    # Graph structure (deterministic random edges).
    edges_src = jax.random.randint(keys[6], (num_edges,), 0, num_nodes)
    edges_dst = jax.random.randint(keys[7], (num_edges,), 0, num_nodes)
    a_hat = build_normalized_adjacency(edges_src, edges_dst, num_nodes)

    # Node features.
    features = jax.random.normal(keys[8], (num_nodes, in_feats), jnp.float32)

    # "IP name" -> graph index mapping; names are synthetic ints 1000..1015.
    node_names = [1000 + i for i in range(num_nodes)]
    node_name_to_index = {name: i for i, name in enumerate(node_names)}

    # Query src/dst "IPs" (all present in the mapping, as in typical usage).
    q_src = jax.random.randint(keys[9], (num_query_edges,), 0, num_nodes)
    q_dst = (q_src + 3) % num_nodes
    src = jnp.asarray([node_names[int(i)] for i in q_src], dtype=jnp.int32)
    dst = jnp.asarray([node_names[int(i)] for i in q_dst], dtype=jnp.int32)

    edge_pred = netgcn_forward(a_hat, features, src, dst, node_name_to_index, params)
    edge_pred = jax.block_until_ready(edge_pred)

    assert edge_pred.shape == (num_query_edges, hidden_feats)
    assert edge_pred.dtype == jnp.float32

    # f32 reference check (bf16 MXU operands => loose tolerance).
    ref = netgcn_reference(a_hat, features, q_src, q_dst, params)
    max_err = float(jnp.max(jnp.abs(edge_pred - ref)))
    assert max_err < 3e-2, f"max |kernel - ref| = {max_err}"

    print("KERNEL_OK")
</pallas_src>

<mosaic_0001>
module attributes {stable_mosaic.version = 11 : i64} {
  func.func @netgcn_fused_kernel(%arg0: memref<128x128xbf16, #tpu.memory_space<vmem>>, %arg1: memref<128x128xbf16, #tpu.memory_space<vmem>>, %arg2: memref<128x128xbf16, #tpu.memory_space<vmem>>, %arg3: memref<1x128xf32, #tpu.memory_space<vmem>>, %arg4: memref<128x128xbf16, #tpu.memory_space<vmem>>, %arg5: memref<1x128xf32, #tpu.memory_space<vmem>>, %arg6: memref<256x128xbf16, #tpu.memory_space<vmem>>, %arg7: memref<1x128xf32, #tpu.memory_space<vmem>>, %arg8: memref<32x1xi32, #tpu.memory_space<vmem>>, %arg9: memref<16x128xf32, #tpu.memory_space<vmem>>) attributes {dimension_semantics = [], scalar_prefetch = 0 : i64, scratch_operands = 0 : i64, tpu.core_type = #tpu.core_type<tc>} {
    %c0 = arith.constant 0 : index
    %c0_0 = arith.constant 0 : index
    %0 = vector.load %arg0[%c0, %c0_0] : memref<128x128xbf16, #tpu.memory_space<vmem>>, vector<128x128xbf16>
    %c0_1 = arith.constant 0 : index
    %c0_2 = arith.constant 0 : index
    %1 = vector.load %arg1[%c0_1, %c0_2] : memref<128x128xbf16, #tpu.memory_space<vmem>>, vector<128x128xbf16>
    %cst = arith.constant dense<0.000000e+00> : vector<128x128xf32>
    %2 = tpu.matmul %0, %1, %cst {dimension_numbers = #tpu.dot_dimension_numbers<[1], [0], [0], [1], [0, 0, 1, 1], [], []>} : vector<128x128xbf16>, vector<128x128xbf16>, vector<128x128xf32> -> vector<128x128xf32>
    %3 = arith.truncf %2 : vector<128x128xf32> to vector<128x128xbf16>
    %c0_3 = arith.constant 0 : index
    %c0_4 = arith.constant 0 : index
    %4 = vector.load %arg2[%c0_3, %c0_4] : memref<128x128xbf16, #tpu.memory_space<vmem>>, vector<128x128xbf16>
    %cst_5 = arith.constant dense<0.000000e+00> : vector<128x128xf32>
    %5 = tpu.matmul %3, %4, %cst_5 {dimension_numbers = #tpu.dot_dimension_numbers<[1], [0], [0], [1], [0, 0, 1, 1], [], []>} : vector<128x128xbf16>, vector<128x128xbf16>, vector<128x128xf32> -> vector<128x128xf32>
    %c0_6 = arith.constant 0 : index
    %c0_7 = arith.constant 0 : index
    %6 = vector.load %arg3[%c0_6, %c0_7] : memref<1x128xf32, #tpu.memory_space<vmem>>, vector<1x128xf32>
    %7 = vector.broadcast %6 : vector<1x128xf32> to vector<128x128xf32>
    %8 = arith.addf %5, %7 : vector<128x128xf32>
    %cst_8 = arith.constant 0.000000e+00 : f32
    %9 = vector.broadcast %cst_8 : f32 to vector<128x128xf32>
    %10 = arith.maximumf %8, %9 : vector<128x128xf32>
    %11 = arith.truncf %10 : vector<128x128xf32> to vector<128x128xbf16>
    %cst_9 = arith.constant dense<0.000000e+00> : vector<128x128xf32>
    %12 = tpu.matmul %0, %11, %cst_9 {dimension_numbers = #tpu.dot_dimension_numbers<[1], [0], [0], [1], [0, 0, 1, 1], [], []>} : vector<128x128xbf16>, vector<128x128xbf16>, vector<128x128xf32> -> vector<128x128xf32>
    %13 = arith.truncf %12 : vector<128x128xf32> to vector<128x128xbf16>
    %c0_10 = arith.constant 0 : index
    %c0_11 = arith.constant 0 : index
    %14 = vector.load %arg4[%c0_10, %c0_11] : memref<128x128xbf16, #tpu.memory_space<vmem>>, vector<128x128xbf16>
    %cst_12 = arith.constant dense<0.000000e+00> : vector<128x128xf32>
    %15 = tpu.matmul %13, %14, %cst_12 {dimension_numbers = #tpu.dot_dimension_numbers<[1], [0], [0], [1], [0, 0, 1, 1], [], []>} : vector<128x128xbf16>, vector<128x128xbf16>, vector<128x128xf32> -> vector<128x128xf32>
    %c0_13 = arith.constant 0 : index
    %c0_14 = arith.constant 0 : index
    %16 = vector.load %arg5[%c0_13, %c0_14] : memref<1x128xf32, #tpu.memory_space<vmem>>, vector<1x128xf32>
    %17 = vector.broadcast %16 : vector<1x128xf32> to vector<128x128xf32>
    %18 = arith.addf %15, %17 : vector<128x128xf32>
    %19 = arith.truncf %18 : vector<128x128xf32> to vector<128x128xbf16>
    %20 = tpu.iota {dimensions = array<i32: 1>} : vector<32x128xi32>
    %c0_15 = arith.constant 0 : index
    %c0_16 = arith.constant 0 : index
    %21 = vector.load %arg8[%c0_15, %c0_16] : memref<32x1xi32, #tpu.memory_space<vmem>>, vector<32x1xi32>
    %22 = vector.broadcast %21 : vector<32x1xi32> to vector<32x128xi32>
    %23 = arith.cmpi eq, %20, %22 : vector<32x128xi32>
    %cst_17 = arith.constant 1.000000e+00 : f32
    %cst_18 = arith.constant 0.000000e+00 : f32
    %24 = vector.broadcast %cst_17 : f32 to vector<32x128xf32>
    %25 = vector.broadcast %cst_18 : f32 to vector<32x128xf32>
    %26 = arith.select %23, %24, %25 : vector<32x128xi1>, vector<32x128xf32>
    %27 = arith.truncf %26 : vector<32x128xf32> to vector<32x128xbf16>
    %cst_19 = arith.constant dense<0.000000e+00> : vector<32x128xf32>
    %28 = tpu.matmul %27, %19, %cst_19 {dimension_numbers = #tpu.dot_dimension_numbers<[1], [0], [0], [1], [0, 0, 1, 1], [], []>} : vector<32x128xbf16>, vector<128x128xbf16>, vector<32x128xf32> -> vector<32x128xf32>
    %29 = arith.truncf %28 : vector<32x128xf32> to vector<32x128xbf16>
    %30 = vector.extract_strided_slice %29 {offsets = [0, 0], sizes = [16, 128], strides = [1, 1]} : vector<32x128xbf16> to vector<16x128xbf16>
    %31 = vector.extract_strided_slice %29 {offsets = [16, 0], sizes = [16, 128], strides = [1, 1]} : vector<32x128xbf16> to vector<16x128xbf16>
    %32 = tpu.concatenate %30, %31 in 1 : vector<16x128xbf16>, vector<16x128xbf16> -> vector<16x256xbf16>
    %c0_20 = arith.constant 0 : index
    %c0_21 = arith.constant 0 : index
    %33 = vector.load %arg6[%c0_20, %c0_21] : memref<256x128xbf16, #tpu.memory_space<vmem>>, vector<256x128xbf16>
    %cst_22 = arith.constant dense<0.000000e+00> : vector<16x128xf32>
    %34 = tpu.matmul %32, %33, %cst_22 {dimension_numbers = #tpu.dot_dimension_numbers<[1], [0], [0], [1], [0, 0, 1, 1], [], []>} : vector<16x256xbf16>, vector<256x128xbf16>, vector<16x128xf32> -> vector<16x128xf32>
    %c0_23 = arith.constant 0 : index
    %c0_24 = arith.constant 0 : index
    %35 = vector.load %arg7[%c0_23, %c0_24] : memref<1x128xf32, #tpu.memory_space<vmem>>, vector<1x128xf32>
    %36 = vector.broadcast %35 : vector<1x128xf32> to vector<16x128xf32>
    %37 = arith.addf %34, %36 : vector<16x128xf32>
    %c0_25 = arith.constant 0 : index
    %c0_26 = arith.constant 0 : index
    %38 = vector.load %arg9[%c0_25, %c0_26] : memref<16x128xf32, #tpu.memory_space<vmem>>, vector<16x128xf32>
    tpu.vector_store %arg9[%c0_25, %c0_26], %37 {strides = array<i32>} : memref<16x128xf32, #tpu.memory_space<vmem>>, vector<16x128xf32>,
    return
  }
}

</mosaic_0001>

<bundles_post_ra>
// kernel: tpu_custom_call.1
= control target key start
LH: loop header
LB: loop body
LE: loop exit
PB: predicated region body
PF: predicated region fallthrough
CT: control target
= control target key end

     0   :  { %14 = vsyncpa [#allocation3], 0  ;;  %s1805_s0 = inlined_call_operand.hbm [shape: bf16[128,128], index: 0, kind: input, shape index: {}]   ;;  %s1806_s1 = inlined_call_operand.hbm [shape: bf16[128,128], index: 1, kind: input, shape index: {}]   ;;  %s1807_s2 = inlined_call_operand.hbm [shape: bf16[128,128], index: 2, kind: input, shape index: {}]   ;;  %s1808_s3 = inlined_call_operand.vmem [shape: f32[1,128], index: 3, kind: input, shape index: {}]   ;;  %s1809_s4 = inlined_call_operand.hbm [shape: bf16[128,128], index: 4, kind: input, shape index: {}]   ;;  %s1810_s5 = inlined_call_operand.vmem [shape: f32[1,128], index: 5, kind: input, shape index: {}]   ;;  %s1811_s6 = inlined_call_operand.hbm [shape: bf16[256,128], index: 6, kind: input, shape index: {}]   ;;  %s1812_s7 = inlined_call_operand.vmem [shape: f32[1,128], index: 7, kind: input, shape index: {}]   ;;  %s1813_s8 = inlined_call_operand.vmem [shape: s32[32,1], index: 8, kind: input, shape index: {}]   ;;  %s1814_s9 = inlined_call_operand.hbm [shape: f32[16,128], index: 9, kind: output, shape index: {}]  }
   0x1   :  { %15 = vsyncpa [#allocation6], 0 }
   0x2   :  { %16 = vsyncpa [#allocation9], 0 }
   0x3   :  { %17 = vsyncpa [#allocation4], 0  ;;  %s1585_s30 = smov [#allocation5]   ;;  %s1586_s11 = smov [#allocation8]  }
   0x4   :  { %s35_s10 = sshll.u32 %s1585_s30, 4  ;;  %s61_s12 = sshll.u32 %s1586_s11, 4  ;;  %s36_s10 = int_to_ptr.vmem [resolvable:$true] %s35_s10  ;;  %s1647_s12 = int_to_ptr.vmem [resolvable:$true] %s61_s12 }
   0x5   :  { %s1445_s15 = scalar_lea.hbm %s1806_s1, 1024 }
   0x6   :  { %p1446_p0 = scmp.ne.s32.totalorder %s1806_s1, %s1445_s15  ;;  %p1449_p1 = scmp.lt.u32.totalorder %s1445_s15, %s1806_s1 }
   0x8   :  { %p1451_p2 = pnand %p1449_p1, %p1446_p0 }
   0xa   :  { %1454 = shalt.err (!%p1451_p2)
}
   0xb   :  { %s1455_s20 = scalar_lea.vmem %s36_s10, 1024  ;;  %p1460_p4 = scmp.lt.s32.totalorder %s36_s10, %s36_s10 }
   0xc   :  { %p1456_p3 = scmp.ne.s32.totalorder %s36_s10, %s1455_s20  ;;  %p1461_p5 = scmp.lt.s32.totalorder %s1455_s20, %s1455_s20 }
   0xe   :  { %p1462_p6 = por %p1461_p5, %p1460_p4 }
  0x10   :  { %p1463_p7 = pnand %p1462_p6, %p1456_p3 }
  0x12   :  { %1466 = shalt.err (!%p1463_p7)
}
  0x13   :  { %s1587_s21 = smov 64   ;;  %s1588_s22 = smov 4  }
  0x14   :  { %41 = dma.hbm_to_vmem [thread:$0]  %s1806_s1, 1024, %s36_s10, [#allocation6], %s1587_s21, %s1587_s21, %s1588_s22  }
  0x15   :  { %s1467_s27 = scalar_lea.hbm %s1809_s4, 1024 }
  0x16   :  { %p1468_p8 = scmp.ne.s32.totalorder %s1809_s4, %s1467_s27  ;;  %p1471_p9 = scmp.lt.u32.totalorder %s1467_s27, %s1809_s4 }
  0x18   :  { %p1473_p10 = pnand %p1471_p9, %p1468_p8 }
  0x1a   :  { %1476 = shalt.err (!%p1473_p10)
}
  0x1b   :  { %s1477_s13 = scalar_lea.vmem %s1647_s12, 1024  ;;  %p1482_p12 = scmp.lt.s32.totalorder %s1647_s12, %s1647_s12 }
  0x1c   :  { %p1478_p11 = scmp.ne.s32.totalorder %s1647_s12, %s1477_s13  ;;  %p1483_p13 = scmp.lt.s32.totalorder %s1477_s13, %s1477_s13 }
  0x1e   :  { %p1484_p0 = por %p1483_p13, %p1482_p12 }
  0x20   :  { %p1485_p1 = pnand %p1484_p0, %p1478_p11 }
  0x22   :  { %1488 = shalt.err (!%p1485_p1)
}
  0x23   :  { %67 = dma.hbm_to_vmem [thread:$0]  %s1809_s4, 1024, %s1647_s12, [#allocation9], %s1587_s21, %s1587_s21, %s1588_s22  }
  0x24   :  { %s1589_s14 = smov [#allocation2]   ;;  %s1590_s16 = smov [#allocation7]  }
  0x25   :  { %s23_s15 = sshll.u32 %s1589_s14, 4  ;;  %s47_s17 = sshll.u32 %s1590_s16, 4  ;;  %s24_s15 = int_to_ptr.vmem [resolvable:$true] %s23_s15  ;;  %s1684_s17 = int_to_ptr.vmem [resolvable:$true] %s47_s17 }
  0x26   :  { %s1489_s20 = scalar_lea.hbm %s1805_s0, 1024 }
  0x27   :  { %p1490_p2 = scmp.ne.s32.totalorder %s1805_s0, %s1489_s20  ;;  %p1493_p3 = scmp.lt.u32.totalorder %s1489_s20, %s1805_s0 }
  0x29   :  { %p1495_p4 = pnand %p1493_p3, %p1490_p2 }
  0x2b   :  { %1498 = shalt.err (!%p1495_p4)
}
  0x2c   :  { %s1499_s4 = scalar_lea.vmem %s24_s15, 1024  ;;  %p1504_p6 = scmp.lt.s32.totalorder %s24_s15, %s24_s15 }
  0x2d   :  { %p1500_p5 = scmp.ne.s32.totalorder %s24_s15, %s1499_s4  ;;  %p1505_p7 = scmp.lt.s32.totalorder %s1499_s4, %s1499_s4 }
  0x2f   :  { %p1506_p8 = por %p1505_p7, %p1504_p6 }
  0x31   :  { %p1507_p9 = pnand %p1506_p8, %p1500_p5 }
  0x33   :  { %1510 = shalt.err (!%p1507_p9)
}
  0x34   :  { %29 = dma.hbm_to_vmem [thread:$0]  %s1805_s0, 1024, %s24_s15, [#allocation3], %s1587_s21, %s1587_s21, %s1588_s22  }
  0x35   :  { %s1511_s30 = scalar_lea.hbm %s1807_s2, 1024 }
  0x36   :  { %p1512_p10 = scmp.ne.s32.totalorder %s1807_s2, %s1511_s30  ;;  %p1515_p11 = scmp.lt.u32.totalorder %s1511_s30, %s1807_s2 }
  0x38   :  { %p1517_p12 = pnand %p1515_p11, %p1512_p10 }
  0x3a   :  { %1520 = shalt.err (!%p1517_p12)
}
  0x3b   :  { %s1521_s14 = scalar_lea.vmem %s1684_s17, 1024  ;;  %p1526_p0 = scmp.lt.s32.totalorder %s1684_s17, %s1684_s17 }
  0x3c   :  { %p1522_p13 = scmp.ne.s32.totalorder %s1684_s17, %s1521_s14  ;;  %p1527_p1 = scmp.lt.s32.totalorder %s1521_s14, %s1521_s14 }
  0x3e   :  { %p1528_p2 = por %p1527_p1, %p1526_p0 }
  0x40   :  { %p1529_p3 = pnand %p1528_p2, %p1522_p13 }
  0x42   :  { %1532 = shalt.err (!%p1529_p3)
}
  0x43   :  { %53 = dma.hbm_to_vmem [thread:$0]  %s1807_s2, 1024, %s1684_s17, [#allocation6], %s1587_s21, %s1587_s21, %s1588_s22  }
  0x44   :  { %s1591_s16 = smov [#allocation10]   ;;  %s1533_s23 = scalar_lea.hbm %s1811_s6, 2048 }
  0x45   :  { %s75_s18 = sshll.u32 %s1591_s16, 4  ;;  %p1534_p4 = scmp.ne.s32.totalorder %s1811_s6, %s1533_s23  ;;  %s76_s18 = int_to_ptr.vmem [resolvable:$true] %s75_s18 }
  0x46   :  { %p1537_p5 = scmp.lt.u32.totalorder %s1533_s23, %s1811_s6 }
  0x48   :  { %p1539_p6 = pnand %p1537_p5, %p1534_p4 }
  0x4a   :  { %1542 = shalt.err (!%p1539_p6)
}
  0x4b   :  { %s1543_s12 = scalar_lea.vmem %s76_s18, 2048  ;;  %p1548_p8 = scmp.lt.s32.totalorder %s76_s18, %s76_s18 }
  0x4c   :  { %p1544_p7 = scmp.ne.s32.totalorder %s76_s18, %s1543_s12  ;;  %p1549_p9 = scmp.lt.s32.totalorder %s1543_s12, %s1543_s12 }
  0x4e   :  { %p1550_p10 = por %p1549_p9, %p1548_p8 }
  0x50   :  { %p1551_p11 = pnand %p1550_p10, %p1544_p7 }
  0x52   :  { %1554 = shalt.err (!%p1551_p11)
}
  0x53   :  { %81 = dma.hbm_to_vmem [thread:$0]  %s1811_s6, 2048, %s76_s18, [#allocation9], %s1587_s21, %s1587_s21, %s1588_s22  }
  0x54   :  { %1577 = dma.done.wait [#allocation3], 1024  }
  0x55   :  { %1578 = vsyncadd [#allocation3], 4294966272 }
  0x56   :  { %1579 = dma.done.wait [#allocation6], 2048  }
  0x57   :  { %1580 = vsyncadd [#allocation6], 4294965248 }
  0x58   :  { %1581 = dma.done.wait [#allocation9], 3072  }
  0x59   :  { %1582 = vsyncadd [#allocation9], 4294964224  ;;  %v1397_v0 = vld [vmem:[#allocation5] sm:$0xff]   ;;  %v1398_v1 = vld [vmem:[#allocation5 + $0x8] sm:$0xff]   ;;  %s1594_s14 = smov [#allocation11]  }
  0x5a   :  { %1235 = vmatprep.subr.bf16.mxu0 %v1397_v0  ;;  %v1399_v2 = vld [vmem:[#allocation5 + $0x10] sm:$0xff]   ;;  %v1400_v3 = vld [vmem:[#allocation5 + $0x18] sm:$0xff]   ;;  %v1405_v4 = vld [vmem:[#allocation2] sm:$0xff]   ;;  %s1070_s0 = sshll.u32 %s1594_s14, 4  ;;  %s1071_s0 = int_to_ptr.vmem [resolvable:$true] %s1070_s0 }
  0x5b   :  { %1236 = vmatpush3.bf16.msra.mxu0 %v1397_v0  ;;  %1251 = vmatprep.mubr.bf16.mxu0 %v1405_v4  ;;  %v1401_v5 = vld [vmem:[#allocation5 + $0x20] sm:$0xff]   ;;  %v1402_v6 = vld [vmem:[#allocation5 + $0x28] sm:$0xff]   ;;  %v1403_v9 = vld [vmem:[#allocation5 + $0x30] sm:$0xff]   ;;  %s1555_s15 = scalar_lea.vmem %s1071_s0, 256  ;;  %p1560_p13 = scmp.lt.s32.totalorder %s1071_s0, %s1071_s0 }
  0x5c   :  { %1237 = vmatprep.subr.bf16.mxu0 %v1398_v1  ;;  %v1413_v7 = vld [vmem:[#allocation7] sm:$0xff]   ;;  %v1414_v8 = vld [vmem:[#allocation7 + $0x8] sm:$0xff]   ;;  %v1415_v10 = vld [vmem:[#allocation7 + $0x10] sm:$0xff]   ;;  %p1556_p12 = scmp.ne.s32.totalorder %s1071_s0, %s1555_s15  ;;  %p1561_p0 = scmp.lt.s32.totalorder %s1555_s15, %s1555_s15 }
  0x5d   :  { %1267 = vmatprep.subr.bf16.mxu1 %v1413_v7  ;;  %v1404_v11 = vld [vmem:[#allocation5 + $0x38] sm:$0xff]   ;;  %v1417_v13 = vld [vmem:[#allocation7 + $0x20] sm:$0xff]   ;;  %v1736_v14 = vld [vmem:[#allocation2 + $0x8] sm:$0xff]  }
  0x5e   :  { %1268 = vmatpush3.bf16.msra.mxu1 %v1413_v7  ;;  %v1416_v12 = vld [vmem:[#allocation7 + $0x18] sm:$0xff]   ;;  %v1738_v15 = vld [vmem:[#allocation2 + $0x10] sm:$0xff]   ;;  %v1418_v16 = vld [vmem:[#allocation7 + $0x28] sm:$0xff]   ;;  %p1562_p1 = por %p1561_p0, %p1560_p13 }
  0x5f   :  { %1238 = vmatpush3.bf16.msra.mxu0 %v1398_v1  ;;  %1269 = vmatprep.subr.bf16.mxu1 %v1414_v8  ;;  %v1419_v17 = vld [vmem:[#allocation7 + $0x30] sm:$0xff]   ;;  %v1742_v18 = vld [vmem:[#allocation2 + $0x18] sm:$0xff]   ;;  %v1744_v19 = vld [vmem:[#allocation2 + $0x20] sm:$0xff]  }
  0x60   :  { %1239 = vmatprep.subr.bf16.mxu0 %v1399_v2  ;;  %v1748_v20 = vld [vmem:[#allocation2 + $0x28] sm:$0xff]   ;;  %v1750_v21 = vld [vmem:[#allocation2 + $0x30] sm:$0xff]   ;;  %v1754_v22 = vld [vmem:[#allocation2 + $0x38] sm:$0xff]   ;;  %p1563_p2 = pnand %p1562_p1, %p1556_p12 }
  0x61   :  { %v1420_v23 = vld [vmem:[#allocation7 + $0x38] sm:$0xff]   ;;  %v1421_v48 = vld [vmem:[#allocation8] sm:$0xff]   ;;  %v1422_v49 = vld [vmem:[#allocation8 + $0x8] sm:$0xff]  }
  0x62   :  { %1270 = vmatpush3.bf16.msra.mxu1 %v1414_v8  ;;  %v1423_v50 = vld [vmem:[#allocation8 + $0x10] sm:$0xff]   ;;  %v1424_v51 = vld [vmem:[#allocation8 + $0x18] sm:$0xff]   ;;  %v1425_v52 = vld [vmem:[#allocation8 + $0x20] sm:$0xff]  }
  0x63   :  { %1240 = vmatpush3.bf16.msra.mxu0 %v1399_v2  ;;  %1271 = vmatprep.subr.bf16.mxu1 %v1415_v10  ;;  %v1426_v53 = vld [vmem:[#allocation8 + $0x28] sm:$0xff]   ;;  %v1427_v54 = vld [vmem:[#allocation8 + $0x30] sm:$0xff]   ;;  %v1100_v55 = vld [vmem:[%s1808_s3] ss:$0 sm:$0xff] }
  0x64   :  { %1241 = vmatprep.subr.bf16.mxu0 %v1400_v3 }
  0x66   :  { %1272 = vmatpush3.bf16.msra.mxu1 %v1415_v10 }
  0x67   :  { %1242 = vmatpush3.bf16.msra.mxu0 %v1400_v3  ;;  %1273 = vmatprep.subr.bf16.mxu1 %v1416_v12 }
  0x68   :  { %1243 = vmatprep.subr.bf16.mxu0 %v1401_v5 }
  0x6a   :  { %1274 = vmatpush3.bf16.msra.mxu1 %v1416_v12 }
  0x6b   :  { %1244 = vmatpush3.bf16.msra.mxu0 %v1401_v5  ;;  %1275 = vmatprep.subr.bf16.mxu1 %v1417_v13 }
  0x6c   :  { %1245 = vmatprep.subr.bf16.mxu0 %v1402_v6 }
  0x6e   :  { %1276 = vmatpush3.bf16.msra.mxu1 %v1417_v13 }
  0x6f   :  { %1246 = vmatpush3.bf16.msra.mxu0 %v1402_v6  ;;  %1277 = vmatprep.subr.bf16.mxu1 %v1418_v16 }
  0x70   :  { %1247 = vmatprep.subr.bf16.mxu0 %v1403_v9 }
  0x72   :  { %1278 = vmatpush3.bf16.msra.mxu1 %v1418_v16 }
  0x73   :  { %1248 = vmatpush3.bf16.msra.mxu0 %v1403_v9  ;;  %1279 = vmatprep.subr.bf16.mxu1 %v1419_v17 }
  0x74   :  { %1249 = vmatprep.subr.bf16.mxu0 %v1404_v11 }
  0x76   :  { %1280 = vmatpush3.bf16.msra.mxu1 %v1419_v17 }
  0x77   :  { %1250 = vmatpush3.bf16.msra.mxu0 %v1404_v11  ;;  %1281 = vmatprep.subr.bf16.mxu1 %v1420_v23 }
  0x7a   :  { %1252 = vmatmul.mubr.bf16.vlgmr.msra.gmra.mrb[0].mxu0 %v1736_v14  ;;  %1282 = vmatpush3.bf16.msra.mxu1 %v1420_v23 }
  0x7b   :  { %1255 = vmatprep.mubr.bf16.mxu0 %v1738_v15  ;;  %1331 = vmatprep.subr.bf16.mxu1 %v1421_v48 }
  0x82   :  { %1256 = vmatmul.mubr.bf16.gmra.mrb[4].mxu0 %v1742_v18 }
  0x83   :  { %1259 = vmatprep.mubr.bf16.mxu0 %v1744_v19 }
  0x8a   :  { %1260 = vmatmul.mubr.bf16.gmra.mrb[8].mxu0 %v1748_v20 }
  0x8b   :  { %1263 = vmatprep.mubr.bf16.mxu0 %v1750_v21 }
  0x92   :  { %1264 = vmatmul.mubr.bf16.gmra.mrb[12].mxu0 %v1754_v22 }
  0x93   :  { %1315 = vmatprep.mubr.bf16.mxu0 %v1405_v4 }
 0x14d   :  { %v1253_v24 = vpop.f32.mrb[0].mxu0 }
 0x14e   :  { %v264_v25 = vpop.f32.mrb[1].mxu0 }
 0x14f   :  { %v1254_v26 = vpop.f32.mrb[2].mxu0 }
 0x150   :  { %v328_v27 = vpack.c.bf16 %v1254_v26, %v1253_v24  ;;  %v267_v28 = vpop.f32.mrb[3].mxu0 }
 0x151   :  { %v327_v29 = vpack.c.bf16 %v267_v28, %v264_v25 }
 0x153   :  { %1283 = vmatprep.mubr.bf16.mxu1 %v327_v29 }
 0x154   :  { %1284 = vmatmul.mubr.bf16.vlgmr.msra.gmra.mrb[0].mxu1 %v328_v27 }
 0x155   :  { %v1257_v30 = vpop.f32.mrb[4].mxu0  ;;  %1332 = vmatpush3.bf16.msra.mxu1 %v1421_v48 }
 0x156   :  { %v280_v31 = vpop.f32.mrb[5].mxu0  ;;  %1333 = vmatprep.subr.bf16.mxu1 %v1422_v49 }
 0x157   :  { %v1258_v32 = vpop.f32.mrb[6].mxu0 }
 0x158   :  { %v330_v33 = vpack.c.bf16 %v1258_v32, %v1257_v30  ;;  %v283_v34 = vpop.f32.mrb[7].mxu0 }
 0x159   :  { %v329_v35 = vpack.c.bf16 %v283_v34, %v280_v31  ;;  %1334 = vmatpush3.bf16.msra.mxu1 %v1422_v49 }
 0x15a   :  { %1335 = vmatprep.subr.bf16.mxu1 %v1423_v50 }
 0x15b   :  { %1287 = vmatprep.mubr.bf16.mxu1 %v329_v35 }
 0x15c   :  { %1288 = vmatmul.mubr.bf16.gmra.mrb[4].mxu1 %v330_v33 }
 0x15d   :  { %v1261_v36 = vpop.f32.mrb[8].mxu0  ;;  %1336 = vmatpush3.bf16.msra.mxu1 %v1423_v50 }
 0x15e   :  { %v296_v37 = vpop.f32.mrb[9].mxu0  ;;  %1337 = vmatprep.subr.bf16.mxu1 %v1424_v51 }
 0x15f   :  { %v1262_v38 = vpop.f32.mrb[10].mxu0 }
 0x160   :  { %v332_v39 = vpack.c.bf16 %v1262_v38, %v1261_v36  ;;  %v299_v40 = vpop.f32.mrb[11].mxu0 }
 0x161   :  { %v331_v41 = vpack.c.bf16 %v299_v40, %v296_v37  ;;  %1338 = vmatpush3.bf16.msra.mxu1 %v1424_v51 }
 0x162   :  { %1339 = vmatprep.subr.bf16.mxu1 %v1425_v52 }
 0x163   :  { %1291 = vmatprep.mubr.bf16.mxu1 %v331_v41 }
 0x164   :  { %1292 = vmatmul.mubr.bf16.gmra.mrb[8].mxu1 %v332_v39 }
 0x165   :  { %v1265_v42 = vpop.f32.mrb[12].mxu0  ;;  %1340 = vmatpush3.bf16.msra.mxu1 %v1425_v52 }
 0x166   :  { %v312_v43 = vpop.f32.mrb[13].mxu0  ;;  %1341 = vmatprep.subr.bf16.mxu1 %v1426_v53 }
 0x167   :  { %v1266_v44 = vpop.f32.mrb[14].mxu0 }
 0x168   :  { %v334_v45 = vpack.c.bf16 %v1266_v44, %v1265_v42  ;;  %v315_v46 = vpop.f32.mrb[15].mxu0 }
 0x169   :  { %v333_v47 = vpack.c.bf16 %v315_v46, %v312_v43  ;;  %1342 = vmatpush3.bf16.msra.mxu1 %v1426_v53 }
 0x16a   :  { %1343 = vmatprep.subr.bf16.mxu1 %v1427_v54 }
 0x16b   :  { %1295 = vmatprep.mubr.bf16.mxu1 %v333_v47 }
 0x16c   :  { %1296 = vmatmul.mubr.bf16.gmra.mrb[12].mxu1 %v334_v45 }
 0x16d   :  { %1344 = vmatpush3.bf16.msra.mxu1 %v1427_v54 }
 0x227   :  { %v1285_v56 = vpop.f32.mrb[0].mxu1 }
 0x228   :  { %v449_v57 = vadd.f32 %v1285_v56, %v1100_v55  ;;  %v440_v58 = vpop.f32.mrb[1].mxu1  ;;  %v810_v56 = vld [vmem:[%s1813_s8] sm:$0xff] }
 0x229   :  { %v441_v59 = vadd.f32 %v1100_v55, %v440_v58  ;;  %v1286_v60 = vpop.f32.mrb[2].mxu1 }
 0x22a   :  { %v452_v61 = vadd.f32 %v1286_v60, %v1100_v55  ;;  %v443_v62 = vpop.f32.mrb[3].mxu1  ;;  %v505_v0 = vmax.f32 %v449_v57, 0.0 }
 0x22b   :  { %v444_v63 = vadd.f32 %v1100_v55, %v443_v62  ;;  %v503_v2 = vmax.f32 %v441_v59, 0.0 }
 0x22c   :  { %v506_v1 = vmax.f32 %v452_v61, 0.0 }
 0x22d   :  { %v504_v3 = vmax.f32 %v444_v63, 0.0 }
 0x22e   :  { %v520_v4 = vpack.c.bf16 %v506_v1, %v505_v0 }
 0x22f   :  { %v519_v5 = vpack.c.bf16 %v504_v3, %v503_v2  ;;  %v1289_v6 = vpop.f32.mrb[4].mxu1 }
 0x230   :  { %v465_v7 = vadd.f32 %v1289_v6, %v1100_v55  ;;  %v456_v8 = vpop.f32.mrb[5].mxu1 }
 0x231   :  { %v457_v9 = vadd.f32 %v1100_v55, %v456_v8  ;;  %v1290_v10 = vpop.f32.mrb[6].mxu1  ;;  %1299 = vmatprep.subr.bf16.mxu0 %v519_v5 }
 0x232   :  { %v468_v11 = vadd.f32 %v1290_v10, %v1100_v55  ;;  %v459_v12 = vpop.f32.mrb[7].mxu1  ;;  %1300 = vmatpush3.bf16.msra.mxu0 %v519_v5  ;;  %v509_v16 = vmax.f32 %v465_v7, 0.0 }
 0x233   :  { %v460_v13 = vadd.f32 %v1100_v55, %v459_v12  ;;  %1301 = vmatprep.subr.bf16.mxu0 %v520_v4  ;;  %v507_v23 = vmax.f32 %v457_v9, 0.0 }
 0x234   :  { %v510_v17 = vmax.f32 %v468_v11, 0.0 }
 0x235   :  { %v508_v24 = vmax.f32 %v460_v13, 0.0 }
 0x236   :  { %v522_v25 = vpack.c.bf16 %v510_v17, %v509_v16  ;;  %1302 = vmatpush3.bf16.msra.mxu0 %v520_v4  ;;  %v808_v17 = vlaneseq }
 0x237   :  { %v521_v26 = vpack.c.bf16 %v508_v24, %v507_v23  ;;  %v1293_v27 = vpop.f32.mrb[8].mxu1 }
 0x238   :  { %v481_v28 = vadd.f32 %v1293_v27, %v1100_v55  ;;  %v472_v29 = vpop.f32.mrb[9].mxu1  ;;  %v1779_v23 = vand.u32 127, %v808_v17  ;;  %v1430_v27 = vld [vmem:[#allocation10] sm:$0xff]  }
 0x239   :  { %v473_v30 = vadd.f32 %v1100_v55, %v472_v29  ;;  %v1294_v31 = vpop.f32.mrb[10].mxu1  ;;  %1303 = vmatprep.subr.bf16.mxu0 %v521_v26  ;;  %v1432_v29 = vld [vmem:[#allocation10 + $0x8] sm:$0xff]  }
 0x23a   :  { %v484_v32 = vadd.f32 %v1294_v31, %v1100_v55  ;;  %v475_v33 = vpop.f32.mrb[11].mxu1  ;;  %1304 = vmatpush3.bf16.msra.mxu0 %v521_v26  ;;  %v513_v35 = vmax.f32 %v481_v28, 0.0  ;;  %v1429_v26 = vld [vmem:[#allocation10 + $0x40] sm:$0xff]   ;;  %v1431_v28 = vld [vmem:[#allocation10 + $0x48] sm:$0xff]   ;;  %v1434_v31 = vld [vmem:[#allocation10 + $0x10] sm:$0xff]  }
 0x23b   :  { %v476_v34 = vadd.f32 %v1100_v55, %v475_v33  ;;  %1305 = vmatprep.subr.bf16.mxu0 %v522_v25  ;;  %v511_v37 = vmax.f32 %v473_v30, 0.0  ;;  %v1433_v30 = vld [vmem:[#allocation10 + $0x50] sm:$0xff]   ;;  %v1436_v33 = vld [vmem:[#allocation10 + $0x18] sm:$0xff]  }
 0x23c   :  { %v514_v36 = vmax.f32 %v484_v32, 0.0  ;;  %v1435_v32 = vld [vmem:[#allocation10 + $0x58] sm:$0xff]  }
 0x23d   :  { %v512_v38 = vmax.f32 %v476_v34, 0.0  ;;  %v1437_v34 = vld [vmem:[#allocation10 + $0x60] sm:$0xff]  }
 0x23e   :  { %v524_v39 = vpack.c.bf16 %v514_v36, %v513_v35  ;;  %1306 = vmatpush3.bf16.msra.mxu0 %v522_v25  ;;  %v1593_v25 = vmov 1.0|1.0   ;;  %v1438_v35 = vld [vmem:[#allocation10 + $0x20] sm:$0xff]   ;;  %v1439_v36 = vld [vmem:[#allocation10 + $0x68] sm:$0xff]  }
 0x23f   :  { %v523_v40 = vpack.c.bf16 %v512_v38, %v511_v37  ;;  %v1297_v41 = vpop.f32.mrb[12].mxu1  ;;  %v1440_v37 = vld [vmem:[#allocation10 + $0x28] sm:$0xff]   ;;  %v1441_v38 = vld [vmem:[#allocation10 + $0x70] sm:$0xff]  }
 0x240   :  { %v497_v42 = vadd.f32 %v1297_v41, %v1100_v55  ;;  %v488_v43 = vpop.f32.mrb[13].mxu1  ;;  %v1109_v41 = vld [vmem:[%s1810_s5] ss:$0 sm:$0xff] }
 0x241   :  { %v489_v44 = vadd.f32 %v1100_v55, %v488_v43  ;;  %v1298_v45 = vpop.f32.mrb[14].mxu1  ;;  %1307 = vmatprep.subr.bf16.mxu0 %v523_v40 }
 0x242   :  { %v500_v46 = vadd.f32 %v1298_v45, %v1100_v55  ;;  %v491_v47 = vpop.f32.mrb[15].mxu1  ;;  %1308 = vmatpush3.bf16.msra.mxu0 %v523_v40  ;;  %v517_v49 = vmax.f32 %v497_v42, 0.0 }
 0x243   :  { %v492_v48 = vadd.f32 %v1100_v55, %v491_v47  ;;  %1309 = vmatprep.subr.bf16.mxu0 %v524_v39  ;;  %v515_v51 = vmax.f32 %v489_v44, 0.0  ;;  %v1428_v55 = vld [vmem:[#allocation8 + $0x38] sm:$0xff]  }
 0x244   :  { %v518_v50 = vmax.f32 %v500_v46, 0.0  ;;  %1345 = vmatprep.subr.bf16.mxu1 %v1428_v55 }
 0x245   :  { %v516_v52 = vmax.f32 %v492_v48, 0.0  ;;  %1346 = vmatpush3.bf16.msra.mxu1 %v1428_v55 }
 0x246   :  { %v526_v53 = vpack.c.bf16 %v518_v50, %v517_v49  ;;  %1310 = vmatpush3.bf16.msra.mxu0 %v524_v39  ;;  %1213 = vmatprep.subr.bf16.mxu1 %v1429_v26  ;;  %v1442_v39 = vld [vmem:[#allocation10 + $0x30] sm:$0xff]  }
 0x247   :  { %v525_v54 = vpack.c.bf16 %v516_v52, %v515_v51 }
 0x249   :  { %1311 = vmatprep.subr.bf16.mxu0 %v525_v54 }
 0x24a   :  { %1312 = vmatpush3.bf16.msra.mxu0 %v525_v54 }
 0x24b   :  { %1313 = vmatprep.subr.bf16.mxu0 %v526_v53 }
 0x24e   :  { %1314 = vmatpush3.bf16.msra.mxu0 %v526_v53 }
 0x251   :  { %1316 = vmatmul.mubr.bf16.vlgmr.msra.gmra.mrb[16].mxu0 %v1736_v14  ;;  %v812_v14 = vld [vmem:[%s1813_s8 + $0x10] sm:$0xff] }
 0x252   :  { %1319 = vmatprep.mubr.bf16.mxu0 %v1738_v15  ;;  %v1592_v15 = vmov 0  }
 0x253   :  { %1395 = vset.pattern.permute.xlu0 %v1592_v15  ;;  %1396 = vset.pattern.permute.xlu1 %v1592_v15 }
 0x254   :  { %815 = vperm.xlu0 %1395, %v810_v56   ;;  %821 = vperm.xlu1 %1396, %v812_v14  }
 0x259   :  { %1320 = vmatmul.mubr.bf16.gmra.mrb[20].mxu0 %v1742_v18  ;;  %v811_v18 = vld [vmem:[%s1813_s8 + $0x8] sm:$0xff] }
 0x25a   :  { %1323 = vmatprep.mubr.bf16.mxu0 %v1744_v19  ;;  %v813_v19 = vld [vmem:[%s1813_s8 + $0x18] sm:$0xff]  ;;  %818 = vperm.xlu0 %1395, %v811_v18  }
 0x25b   :  { %824 = vperm.xlu1 %1396, %v813_v19  }
 0x261   :  { %1324 = vmatmul.mubr.bf16.gmra.mrb[24].mxu0 %v1748_v20 }
 0x262   :  { %1327 = vmatprep.mubr.bf16.mxu0 %v1750_v21 }
 0x269   :  { %1328 = vmatmul.mubr.bf16.gmra.mrb[28].mxu0 %v1754_v22 }
 0x2d3   :  { %v816_v16 = vpop.permute.xlu0 %815 }
 0x2d4   :  { %vm826_vm0 = vcmp.eq.s32.totalorder %v1779_v23, %v816_v16 }
 0x2d9   :  { %v819_v24 = vpop.permute.xlu0 %818 }
 0x2da   :  { %vm827_vm1 = vcmp.eq.s32.totalorder %v1779_v23, %v819_v24 }
 0x2db   :  { %vm1118_vm2 = vmpackc.low %vm827_vm1, %vm826_vm0 }
 0x2dc   :  { %1379 = vmatprep.mubr.msk.bf16.mxu0 %vm1118_vm2, %v1593_v25 }
 0x324   :  { %v1317_v20 = vpop.f32.mrb[16].mxu0 }
 0x325   :  { %v561_v21 = vpop.f32.mrb[17].mxu0 }
 0x326   :  { %v1318_v22 = vpop.f32.mrb[18].mxu0 }
 0x327   :  { %v625_v57 = vpack.c.bf16 %v1318_v22, %v1317_v20  ;;  %v564_v58 = vpop.f32.mrb[19].mxu0 }
 0x328   :  { %v624_v59 = vpack.c.bf16 %v564_v58, %v561_v21 }
 0x32a   :  { %1347 = vmatprep.mubr.bf16.mxu1 %v624_v59 }
 0x32b   :  { %1348 = vmatmul.mubr.bf16.vlgmr.msra.gmra.mrb[16].mxu1 %v625_v57 }
 0x32c   :  { %v1321_v60 = vpop.f32.mrb[20].mxu0  ;;  %1214 = vmatpush3.bf16.msra.mxu1 %v1430_v27 }
 0x32d   :  { %v577_v61 = vpop.f32.mrb[21].mxu0  ;;  %1215 = vmatprep.subr.bf16.mxu1 %v1431_v28 }
 0x32e   :  { %v1322_v62 = vpop.f32.mrb[22].mxu0 }
 0x32f   :  { %v627_v63 = vpack.c.bf16 %v1322_v62, %v1321_v60  ;;  %v580_v0 = vpop.f32.mrb[23].mxu0 }
 0x330   :  { %v626_v1 = vpack.c.bf16 %v580_v0, %v577_v61  ;;  %1216 = vmatpush3.bf16.msra.mxu1 %v1432_v29 }
 0x331   :  { %1217 = vmatprep.subr.bf16.mxu1 %v1433_v30 }
 0x332   :  { %1351 = vmatprep.mubr.bf16.mxu1 %v626_v1 }
 0x333   :  { %1352 = vmatmul.mubr.bf16.gmra.mrb[20].mxu1 %v627_v63 }
 0x334   :  { %v1325_v2 = vpop.f32.mrb[24].mxu0  ;;  %1218 = vmatpush3.bf16.msra.mxu1 %v1434_v31 }
 0x335   :  { %v593_v3 = vpop.f32.mrb[25].mxu0  ;;  %1219 = vmatprep.subr.bf16.mxu1 %v1435_v32 }
 0x336   :  { %v1326_v4 = vpop.f32.mrb[26].mxu0 }
 0x337   :  { %v629_v5 = vpack.c.bf16 %v1326_v4, %v1325_v2  ;;  %v596_v6 = vpop.f32.mrb[27].mxu0 }
 0x338   :  { %v628_v7 = vpack.c.bf16 %v596_v6, %v593_v3  ;;  %1220 = vmatpush3.bf16.msra.mxu1 %v1436_v33  ;;  %v822_v6 = vpop.permute.xlu1 %821 }
 0x339   :  { %1221 = vmatprep.subr.bf16.mxu1 %v1437_v34  ;;  %vm828_vm3 = vcmp.eq.s32.totalorder %v1779_v23, %v822_v6 }
 0x33a   :  { %1355 = vmatprep.mubr.bf16.mxu1 %v628_v7 }
 0x33b   :  { %1356 = vmatmul.mubr.bf16.gmra.mrb[24].mxu1 %v629_v5 }
 0x33c   :  { %v1329_v8 = vpop.f32.mrb[28].mxu0  ;;  %1222 = vmatpush3.bf16.msra.mxu1 %v1438_v35 }
 0x33d   :  { %v609_v9 = vpop.f32.mrb[29].mxu0  ;;  %1223 = vmatprep.subr.bf16.mxu1 %v1439_v36 }
 0x33e   :  { %v1330_v10 = vpop.f32.mrb[30].mxu0 }
 0x33f   :  { %v631_v11 = vpack.c.bf16 %v1330_v10, %v1329_v8  ;;  %v612_v12 = vpop.f32.mrb[31].mxu0 }
 0x340   :  { %v630_v13 = vpack.c.bf16 %v612_v12, %v609_v9  ;;  %1224 = vmatpush3.bf16.msra.mxu1 %v1440_v37  ;;  %v1443_v12 = vld [vmem:[#allocation10 + $0x78] sm:$0xff]  }
 0x341   :  { %1225 = vmatprep.subr.bf16.mxu1 %v1441_v38 }
 0x342   :  { %1359 = vmatprep.mubr.bf16.mxu1 %v630_v13  ;;  %v1444_v13 = vld [vmem:[#allocation10 + $0x38] sm:$0xff]  }
 0x343   :  { %1360 = vmatmul.mubr.bf16.gmra.mrb[28].mxu1 %v631_v11  ;;  %v825_v11 = vpop.permute.xlu1 %824 }
 0x344   :  { %1226 = vmatpush3.bf16.msra.mxu1 %v1442_v39  ;;  %vm829_vm4 = vcmp.eq.s32.totalorder %v1779_v23, %v825_v11  ;;  %v1122_v23 = vld [vmem:[%s1812_s7] ss:$0 sm:$0xff] }
 0x345   :  { %vm1120_vm5 = vmpackc.low %vm829_vm4, %vm828_vm3  ;;  %1227 = vmatprep.subr.bf16.mxu1 %v1443_v12 }
 0x348   :  { %1228 = vmatpush3.bf16.msra.mxu1 %v1444_v13 }
 0x3fe   :  { %v1349_v40 = vpop.f32.mrb[16].mxu1 }
 0x3ff   :  { %v737_v42 = vpop.f32.mrb[17].mxu1  ;;  %v746_v44 = vadd.f32 %v1349_v40, %v1109_v41 }
 0x400   :  { %v1350_v43 = vpop.f32.mrb[18].mxu1  ;;  %v738_v47 = vadd.f32 %v1109_v41, %v737_v42 }
 0x401   :  { %v749_v45 = vadd.f32 %v1350_v43, %v1109_v41  ;;  %v740_v46 = vpop.f32.mrb[19].mxu1 }
 0x402   :  { %v741_v48 = vadd.f32 %v1109_v41, %v740_v46 }
 0x403   :  { %v801_v49 = vpack.c.bf16 %v749_v45, %v746_v44 }
 0x404   :  { %v800_v50 = vpack.c.bf16 %v741_v48, %v738_v47 }
 0x406   :  { %v1353_v51 = vpop.f32.mrb[20].mxu1  ;;  %1363 = vmatprep.subr.bf16.mxu0 %v800_v50 }
 0x407   :  { %v753_v52 = vpop.f32.mrb[21].mxu1  ;;  %1364 = vmatpush3.bf16.msra.mxu0 %v800_v50  ;;  %v762_v54 = vadd.f32 %v1353_v51, %v1109_v41 }
 0x408   :  { %v1354_v53 = vpop.f32.mrb[22].mxu1  ;;  %1365 = vmatprep.subr.bf16.mxu0 %v801_v49  ;;  %v754_v14 = vadd.f32 %v1109_v41, %v753_v52 }
 0x409   :  { %v765_v55 = vadd.f32 %v1354_v53, %v1109_v41  ;;  %v756_v56 = vpop.f32.mrb[23].mxu1 }
 0x40a   :  { %v757_v15 = vadd.f32 %v1109_v41, %v756_v56 }
 0x40b   :  { %v803_v18 = vpack.c.bf16 %v765_v55, %v762_v54  ;;  %1366 = vmatpush3.bf16.msra.mxu0 %v801_v49 }
 0x40c   :  { %v802_v19 = vpack.c.bf16 %v757_v15, %v754_v14 }
 0x40e   :  { %v1357_v20 = vpop.f32.mrb[24].mxu1  ;;  %1367 = vmatprep.subr.bf16.mxu0 %v802_v19 }
 0x40f   :  { %v769_v21 = vpop.f32.mrb[25].mxu1  ;;  %1368 = vmatpush3.bf16.msra.mxu0 %v802_v19  ;;  %v778_v57 = vadd.f32 %v1357_v20, %v1109_v41 }
 0x410   :  { %v1358_v22 = vpop.f32.mrb[26].mxu1  ;;  %1369 = vmatprep.subr.bf16.mxu0 %v803_v18  ;;  %v770_v60 = vadd.f32 %v1109_v41, %v769_v21 }
 0x411   :  { %v781_v58 = vadd.f32 %v1358_v22, %v1109_v41  ;;  %v772_v59 = vpop.f32.mrb[27].mxu1 }
 0x412   :  { %v773_v61 = vadd.f32 %v1109_v41, %v772_v59 }
 0x413   :  { %v805_v62 = vpack.c.bf16 %v781_v58, %v778_v57  ;;  %1370 = vmatpush3.bf16.msra.mxu0 %v803_v18 }
 0x414   :  { %v804_v63 = vpack.c.bf16 %v773_v61, %v770_v60 }
 0x416   :  { %v1361_v0 = vpop.f32.mrb[28].mxu1  ;;  %1371 = vmatprep.subr.bf16.mxu0 %v804_v63 }
 0x417   :  { %v785_v1 = vpop.f32.mrb[29].mxu1  ;;  %1372 = vmatpush3.bf16.msra.mxu0 %v804_v63  ;;  %v794_v3 = vadd.f32 %v1361_v0, %v1109_v41 }
 0x418   :  { %v1362_v2 = vpop.f32.mrb[30].mxu1  ;;  %1373 = vmatprep.subr.bf16.mxu0 %v805_v62  ;;  %v786_v7 = vadd.f32 %v1109_v41, %v785_v1 }
 0x419   :  { %v797_v4 = vadd.f32 %v1362_v2, %v1109_v41  ;;  %v788_v5 = vpop.f32.mrb[31].mxu1 }
 0x41a   :  { %v789_v8 = vadd.f32 %v1109_v41, %v788_v5 }
 0x41b   :  { %v807_v9 = vpack.c.bf16 %v797_v4, %v794_v3  ;;  %1374 = vmatpush3.bf16.msra.mxu0 %v805_v62 }
 0x41c   :  { %v806_v10 = vpack.c.bf16 %v789_v8, %v786_v7 }
 0x41e   :  { %1375 = vmatprep.subr.bf16.mxu0 %v806_v10 }
 0x41f   :  { %1376 = vmatpush3.bf16.msra.mxu0 %v806_v10 }
 0x420   :  { %1377 = vmatprep.subr.bf16.mxu0 %v807_v9 }
 0x423   :  { %1378 = vmatpush3.bf16.msra.mxu0 %v807_v9 }
 0x426   :  { %1380 = vmatmul.mubr.msk.bf16.vlgmr.msra.gmra.mrb[32].mxu0 %vm1120_vm5, %v1593_v25 }
 0x4f9   :  { %v1381_v16 = vpop.f32.mrb[32].mxu0 }
 0x4fa   :  { %v870_v17 = vpop.f32.mrb[33].mxu0 }
 0x4fb   :  { %v1382_v24 = vpop.f32.mrb[34].mxu0 }
 0x4fc   :  { %v886_v26 = vpack.c.bf16 %v1382_v24, %v1381_v16  ;;  %v873_v27 = vpop.f32.mrb[35].mxu0 }
 0x4fd   :  { %v885_v28 = vpack.c.bf16 %v873_v27, %v870_v17 }
 0x4fe   :  { %1054 = vmatprep.mubr.bf16.mxu1 %v886_v26 }
 0x4ff   :  { %1055 = vmatmul.mubr.bf16.vlgmr.msra.gmra.mrb[32].mxu1 %v885_v28 }
 0x5d2   :  { %v1229_v29 = vpop.f32.mrb[32].mxu1 }
 0x5d3   :  { %v1230_v30 = vpop.f32.mrb[33].mxu1 }
 0x5d4   :  { %v1231_v31 = vadd.f32 %v1230_v30, %v1229_v29  ;;  %v1232_v25 = vpop.f32.mrb[34].mxu1 }
 0x5d5   :  { %v1233_v32 = vpop.f32.mrb[35].mxu1 }
 0x5d6   :  { %v1057_v33 = vadd.f32 %v1231_v31, %v1122_v23  ;;  %v1234_v34 = vadd.f32 %v1233_v32, %v1232_v25 }
 0x5d8   :  { %1063 = vst [vmem:[#allocation11] sm:$0xff] %v1057_v33  ;;  %v1060_v35 = vadd.f32 %v1234_v34, %v1122_v23 }
 0x5da   :  { %1064 = vst [vmem:[#allocation11 + $0x8] sm:$0xff] %v1060_v35 }
 0x5db   :  { %1566 = shalt.err (!%p1563_p2)
}
 0x5dc   :  { %s1567_s18 = scalar_lea.hbm %s1814_s9, 256 }
 0x5dd   :  { %p1568_p3 = scmp.ne.s32.totalorder %s1814_s9, %s1567_s18  ;;  %p1571_p4 = scmp.lt.u32.totalorder %s1567_s18, %s1814_s9 }
 0x5df   :  { %p1573_p5 = pnand %p1571_p4, %p1568_p3 }
 0x5e1   :  { %1576 = shalt.err (!%p1573_p5)
}
 0x5e2   :  { %s1595_s25 = smov 128   ;;  %s1596_s26 = smov 8  }
 0x5e3   :  { %1076 = dma.vmem_to_hbm [thread:$0]  %s1071_s0, 256, %s1814_s9, [#allocation4], %s1595_s25, %s1595_s25, %s1596_s26  }
 0x5e4   :  { %1583 = dma.done.wait [#allocation4], 256  }
 0x5e5   :  { %1584 = vsyncadd [#allocation4], 4294967040 }
 0x5e6   :  { %1080 = vsyncpa [#allocation3], 1 }
 0x5e7   :  { %1081 = vsyncpa [#allocation6], 1 }
 0x5e8   :  { %1082 = vsyncpa [#allocation9], 1 }
 0x5e9   :  { %1083 = vsyncpa [#allocation4], 1 }

</bundles_post_ra>
